<compile_context>
chip_gen: v6e
topology: v6e:2x2x1
jax: 0.10.0
libtpu: 0.0.40
codegen_flags: <defaults>
</compile_context>

<pallas_src>
import jax
import jax.numpy as jnp
import numpy as np
from jax.experimental import pallas as pl
from jax.experimental.pallas import tpu as pltpu


# ----------------------------- Pallas kernel -------------------------------

def _dcn_kernel(v_ref, g_ref, w_ref, o_ref, acc_ref):
    """Modulated deformable-conv column combine + single MXU matmul.

    v_ref:   (4, Cblk*k2, tm)  gathered corner values (bf16 or f32)
    g_ref:   (3, k2, tm)       dy, dx, mask_logits (bf16 or f32)
    w_ref:   (Cout, Cblk*k2)   DCN weight slice, rows ordered c*k2 + tap
    o_ref:   (Cout, tm)        lane-dense output block (f32)
    acc_ref: (Cout, tm)        f32 accumulator carried over the K grid axis
    """
    kb = pl.program_id(1)

    @pl.when(kb == 0)
    def _():
        acc_ref[...] = jnp.zeros_like(acc_ref)

    k2 = g_ref.shape[1]
    cblk = v_ref.shape[1] // k2

    dy = g_ref[0].astype(jnp.float32)
    dx = g_ref[1].astype(jnp.float32)
    mod = jax.nn.sigmoid(g_ref[2].astype(jnp.float32))   # DCNv2 modulation (EUP)
    hy = 1.0 - dy
    hx = 1.0 - dx

    def corner_term(idx, w_tap):
        # Broadcast the per-tap (k2, tm) weight over the Cblk channels of this
        # K block (row order of v/w is c*k2 + tap), keep live ranges short.
        if cblk > 1:
            w_rows = jnp.concatenate([w_tap] * cblk, axis=0)   # (Cblk*k2, tm)
        else:
            w_rows = w_tap
        return w_rows * v_ref[idx].astype(jnp.float32)

    col = corner_term(0, hy * hx * mod)
    col = col + corner_term(1, hy * dx * mod)
    col = col + corner_term(2, dy * hx * mod)
    col = col + corner_term(3, dy * dx * mod)

    # One matmul over the full Cblk*k2 contraction (bf16 operands on the perf
    # path, f32 accumulate).
    acc_ref[...] += jnp.dot(w_ref[...], col.astype(w_ref.dtype),
                            preferred_element_type=jnp.float32)

    @pl.when(kb == pl.num_programs(1) - 1)
    def _():
        o_ref[...] = acc_ref[...].astype(o_ref.dtype)


def _pick_cblk(C, k2, target_k=256):
    """Channel block so K = Cblk*k2 is ~target_k (use ~128 on v5e)."""
    if C * k2 <= max(target_k, 8):
        return C                     # single K block, no split needed
    best = C                         # fallback: no split
    for d in range(1, C + 1):
        # Cblk*k2 must be sublane-friendly when it doesn't equal C*k2.
        if C % d == 0 and (d * k2) % 8 == 0 and d * k2 <= target_k:
            best = d
    return best


def _pallas_dcn(v, g, w_flat, cout, *, tm=256, cblk=None):
    """v: (4, C*k2, Mp), g: (3, k2, Mp), w_flat: (cout, C*k2) -> (cout, Mp) f32."""
    _, ck2, Mp = v.shape
    k2 = g.shape[1]
    C = ck2 // k2
    assert Mp % tm == 0, "M must be pre-padded to a multiple of tm"
    if cblk is None:
        cblk = _pick_cblk(C, k2)
    assert C % cblk == 0
    kb = C // cblk
    kdim = cblk * k2

    # Explicit scoped-VMEM limit: double-buffered input blocks + output + acc,
    # with margin, capped so the same code stays inside v7x's 64 MiB VMEM.
    block_bytes = (4 * kdim * tm * jnp.dtype(v.dtype).itemsize
                   + 3 * k2 * tm * jnp.dtype(g.dtype).itemsize
                   + cout * kdim * jnp.dtype(w_flat.dtype).itemsize
                   + 2 * cout * tm * 4)
    vmem_limit = int(min(max(4 * block_bytes + (1 << 20), 16 << 20), 48 << 20))

    return pl.pallas_call(
        _dcn_kernel,
        out_shape=jax.ShapeDtypeStruct((cout, Mp), jnp.float32),
        grid=(Mp // tm, kb),                      # reduction (K) axis innermost
        in_specs=[
            pl.BlockSpec((4, kdim, tm), lambda i, j: (0, j, i)),
            pl.BlockSpec((3, k2, tm), lambda i, j: (0, 0, i)),
            pl.BlockSpec((cout, kdim), lambda i, j: (0, j)),
        ],
        out_specs=pl.BlockSpec((cout, tm), lambda i, j: (0, i)),
        scratch_shapes=[pltpu.VMEM((cout, tm), jnp.float32)],
        compiler_params=pltpu.CompilerParams(
            dimension_semantics=("parallel", "arbitrary"),
            vmem_limit_bytes=vmem_limit),
    )(v, g, w_flat)


# ------------------------------- JAX glue ----------------------------------

def _offset_conv(x, w_off, stride, pad):
    """Regular Conv2d (no bias) producing the offset/mask tensor, NCHW.

    Default MXU precision: this conv only feeds floor/frac/sigmoid, so the
    multi-pass f32 HIGHEST path is not worth it (perf review).
    """
    return jax.lax.conv_general_dilated(
        x, w_off, window_strides=(stride, stride),
        padding=[(pad, pad), (pad, pad)],
        dimension_numbers=("NCHW", "OIHW", "NCHW"))


def _sample_positions(offmask, k, stride, dilation, pad):
    """Sampling positions and mask logits, each (k2, N, Ho, Wo) f32."""
    k2 = k * k
    Ho, Wo = offmask.shape[2], offmask.shape[3]
    # Offsets are interleaved (y, x) per tap; mask logits follow (torchvision).
    off_y = jnp.transpose(offmask[:, 0:2 * k2:2], (1, 0, 2, 3))
    off_x = jnp.transpose(offmask[:, 1:2 * k2:2], (1, 0, 2, 3))
    mlog = jnp.transpose(offmask[:, 2 * k2:], (1, 0, 2, 3))
    t = jnp.arange(k2)
    base_y = ((t // k) * dilation)[:, None] + (jnp.arange(Ho) * stride - pad)[None, :]
    base_x = ((t % k) * dilation)[:, None] + (jnp.arange(Wo) * stride - pad)[None, :]
    py = base_y[:, None, :, None].astype(jnp.float32) + off_y     # (k2,N,Ho,Wo)
    px = base_x[:, None, None, :].astype(jnp.float32) + off_x
    return py, px, mlog


def _deform_operands(x, offmask, k, stride, dilation, pad, *, tm, dtype):
    """Build flattened Pallas operands.

    Returns:
      v: (4, C*k2, Mp)  corner samples (dtype)
      g: (3, k2, Mp)    dy, dx, mask_logits (dtype)
    M is padded to Mp (multiple of tm) on the SMALL index/fraction arrays, so
    the big gathered corner slab is produced directly at its padded size.
    """
    N, C, H, W = x.shape
    k2 = k * k
    Ho, Wo = offmask.shape[2], offmask.shape[3]
    M = N * Ho * Wo
    Mp = ((M + tm - 1) // tm) * tm

    py, px, mlog = _sample_positions(offmask, k, stride, dilation, pad)
    y0f = jnp.floor(py)
    x0f = jnp.floor(px)
    dy = (py - y0f).reshape(k2, M)
    dx = (px - x0f).reshape(k2, M)
    mlog = mlog.reshape(k2, M)
    y0 = y0f.astype(jnp.int32).reshape(k2, M)
    x0 = x0f.astype(jnp.int32).reshape(k2, M)
    n_idx = jnp.broadcast_to(jnp.arange(N)[None, :, None, None],
                             (k2, N, Ho, Wo)).reshape(k2, M)

    if Mp != M:   # pad only the small (k2, M) arrays, never the big slab
        pad1 = ((0, 0), (0, Mp - M))
        dy, dx, mlog = [jnp.pad(a, pad1) for a in (dy, dx, mlog)]
        y0, x0, n_idx = [jnp.pad(a, pad1) for a in (y0, x0, n_idx)]

    # Single flattened take over H*W per corner (instead of a 2-index gather).
    # x cast to the compute dtype first so the materialized slab is bf16.
    x_flat = jnp.transpose(x, (1, 0, 2, 3)).reshape(C, N * H * W).astype(dtype)

    def corner(yc, xc):
        valid = ((yc >= 0) & (yc < H) & (xc >= 0) & (xc < W))
        idx = (n_idx * (H * W)
               + jnp.clip(yc, 0, H - 1) * W
               + jnp.clip(xc, 0, W - 1))                         # (k2, Mp)
        vals = jnp.take(x_flat, idx, axis=1, mode="clip")        # (C, k2, Mp)
        return vals * valid[None].astype(dtype)                  # zero OOB

    v = jnp.stack([corner(y0, x0), corner(y0, x0 + 1),
                   corner(y0 + 1, x0), corner(y0 + 1, x0 + 1)], axis=0)
    v = v.reshape(4, C * k2, Mp)                                 # free reshape
    g = jnp.stack([dy, dx, mlog], axis=0).astype(dtype)
    return v, g, (M, Mp, Ho, Wo)


def deformable_conv_v2_forward(x, w_off, w_dcn, k, stride=1, dilation=1,
                               compute_dtype=jnp.bfloat16, tm=256, cblk=None):
    """Full DeformableConvV2.forward (groups=1, bias=None). NCHW in/out."""
    pad_off = (k - 1) // 2
    pad_dcn = (k - 1) // 2 * dilation
    N, C, _, _ = x.shape
    Cout = w_dcn.shape[0]
    k2 = k * k

    offmask = _offset_conv(x, w_off, stride, pad_off)            # (N,3k2,Ho,Wo)
    v, g, (M, Mp, Ho, Wo) = _deform_operands(
        x, offmask, k, stride, dilation, pad_dcn, tm=tm, dtype=compute_dtype)

    # Weight flattened to (Cout, C*k2), rows ordered c*k2 + tap (matches v).
    w_flat = w_dcn.reshape(Cout, C * k2).astype(compute_dtype)

    out = _pallas_dcn(v, g, w_flat, Cout, tm=tm, cblk=cblk)      # (Cout, Mp)
    out = out[:, :M].reshape(Cout, N, Ho, Wo)
    return jnp.transpose(out, (1, 0, 2, 3))                      # NCHW


# --------------------------- pure-JAX reference ----------------------------

def _reference(x, w_off, w_dcn, k, stride=1, dilation=1):
    """Independent f32 reference (uses the classic 2-index gather path)."""
    pad_off = (k - 1) // 2
    pad_dcn = (k - 1) // 2 * dilation
    N, C, H, W = x.shape
    Cout = w_dcn.shape[0]
    k2 = k * k
    offmask = _offset_conv(x, w_off, stride, pad_off)
    Ho, Wo = offmask.shape[2], offmask.shape[3]
    py, px, mlog = _sample_positions(offmask, k, stride, dilation, pad_dcn)
    y0f = jnp.floor(py)
    x0f = jnp.floor(px)
    dy = py - y0f
    dx = px - x0f
    y0 = y0f.astype(jnp.int32)
    x0 = x0f.astype(jnp.int32)
    x_cnhw = jnp.transpose(x, (1, 0, 2, 3))
    n_idx = jnp.arange(N)[None, :, None, None]

    def gather(yc, xc):
        valid = ((yc >= 0) & (yc < H) & (xc >= 0) & (xc < W)).astype(x.dtype)
        vals = x_cnhw[:, n_idx, jnp.clip(yc, 0, H - 1), jnp.clip(xc, 0, W - 1)]
        return vals * valid[None]                                # (C,k2,N,Ho,Wo)

    val = ((1 - dy) * (1 - dx) * gather(y0, x0)
           + (1 - dy) * dx * gather(y0, x0 + 1)
           + dy * (1 - dx) * gather(y0 + 1, x0)
           + dy * dx * gather(y0 + 1, x0 + 1))
    col = jax.nn.sigmoid(mlog)[None] * val                       # (C,k2,N,Ho,Wo)
    col = col.reshape(C, k2, N * Ho * Wo)
    out = jnp.einsum('oct,ctm->om', w_dcn.reshape(Cout, C, k2), col,
                     precision=jax.lax.Precision.HIGHEST)        # (Cout, M)
    return jnp.transpose(out.reshape(Cout, N, Ho, Wo), (1, 0, 2, 3))


# --------------------------------- main ------------------------------------

if __name__ == "__main__":
    key = jax.random.PRNGKey(0)
    kx, kwo, kwd = jax.random.split(key, 3)

    # DeformableConvV2(in_channels=4, out_channels=8, kernel_size=3) defaults:
    # stride=1, dilation=1, groups=1, bias=None -> no biases anywhere.
    N, Cin, H, W = 2, 4, 16, 16
    Cout, ksize = 8, 3

    x = jax.random.normal(kx, (N, Cin, H, W), jnp.float32)
    # conv_offset weight: (3*k*k*groups, Cin, k, k); small scale keeps offsets sane.
    w_off = 0.05 * jax.random.normal(
        kwo, (3 * ksize * ksize, Cin, ksize, ksize), jnp.float32)
    # conv_dcn weight: (Cout, Cin//groups, k, k)
    w_dcn = 0.1 * jax.random.normal(kwd, (Cout, Cin, ksize, ksize), jnp.float32)

    fwd = jax.jit(deformable_conv_v2_forward,
                  static_argnames=("k", "stride", "dilation", "compute_dtype",
                                   "tm", "cblk"))

    # Perf path: bf16 corner slab + bf16 g stream + bf16 MXU matmul.
    out_bf16 = jax.block_until_ready(fwd(x, w_off, w_dcn, k=ksize))
    # f32 path: same kernel, all operands f32 (MXU default precision).
    out_f32 = jax.block_until_ready(
        fwd(x, w_off, w_dcn, k=ksize, compute_dtype=jnp.float32))
    ref = jax.block_until_ready(_reference(x, w_off, w_dcn, ksize))

    assert out_bf16.shape == (N, Cout, H, W)
    assert bool(jnp.all(jnp.isfinite(out_bf16)))
    assert bool(jnp.all(jnp.isfinite(out_f32)))

    # Tolerances: the f32 path is limited by default-precision MXU matmul
    # passes; the bf16 path additionally carries ~0.4% relative error from the
    # bf16 corner / g / weight streams and the bf16 MXU matmul.
    np.testing.assert_allclose(np.asarray(out_f32), np.asarray(ref),
                               rtol=1e-2, atol=1e-2)
    np.testing.assert_allclose(np.asarray(out_bf16), np.asarray(ref),
                               rtol=3e-2, atol=3e-2)
    print("KERNEL_OK")
</pallas_src>

<mosaic_0001>
module attributes {stable_mosaic.version = 11 : i64} {
  func.func @_dcn_kernel(%arg0: i32, %arg1: i32, %arg2: memref<4x36x256xbf16, #tpu.memory_space<vmem>>, %arg3: memref<3x9x256xbf16, #tpu.memory_space<vmem>>, %arg4: memref<8x36xbf16, #tpu.memory_space<vmem>>, %arg5: memref<8x256xf32, #tpu.memory_space<vmem>>, %arg6: memref<8x256xf32, #tpu.memory_space<vmem>>) attributes {dimension_semantics = [#tpu.dimension_semantics<parallel>, #tpu.dimension_semantics<arbitrary>], iteration_bounds = array<i64: 2, 1>, scalar_prefetch = 0 : i64, scratch_operands = 1 : i64, tpu.core_type = #tpu.core_type<tc>, window_params = [{transform_indices = @transform_0, window_bounds = array<i64: 4, 36, 256>}, {transform_indices = @transform_1, window_bounds = array<i64: 3, 9, 256>}, {transform_indices = @transform_2, window_bounds = array<i64: 8, 36>}, {transform_indices = @transform_3, window_bounds = array<i64: 8, 256>}]} {
    %c0_i32 = arith.constant 0 : i32
    %0 = arith.cmpi eq, %arg1, %c0_i32 : i32
    %1 = arith.extui %0 : i1 to i32
    %c0_i32_0 = arith.constant 0 : i32
    %2 = arith.cmpi ne, %1, %c0_i32_0 : i32
    scf.if %2 {
      %cst_29 = arith.constant 0.000000e+00 : f32
      %61 = vector.broadcast %cst_29 : f32 to vector<8x256xf32>
      %c0_30 = arith.constant 0 : index
      %c0_31 = arith.constant 0 : index
      %62 = vector.load %arg6[%c0_30, %c0_31] : memref<8x256xf32, #tpu.memory_space<vmem>>, vector<8x256xf32>
      tpu.vector_store %arg6[%c0_30, %c0_31], %61 {strides = array<i32>} : memref<8x256xf32, #tpu.memory_space<vmem>>, vector<8x256xf32>,
    } else {
    }
    %c0 = arith.constant 0 : index
    %c0_1 = arith.constant 0 : index
    %c0_2 = arith.constant 0 : index
    %3 = vector.load %arg3[%c0, %c0_1, %c0_2] : memref<3x9x256xbf16, #tpu.memory_space<vmem>>, vector<1x9x256xbf16>
    %4 = vector.shape_cast %3 : vector<1x9x256xbf16> to vector<9x256xbf16>
    %5 = arith.extf %4 : vector<9x256xbf16> to vector<9x256xf32>
    %c1 = arith.constant 1 : index
    %c0_3 = arith.constant 0 : index
    %c0_4 = arith.constant 0 : index
    %6 = vector.load %arg3[%c1, %c0_3, %c0_4] : memref<3x9x256xbf16, #tpu.memory_space<vmem>>, vector<1x9x256xbf16>
    %7 = vector.shape_cast %6 : vector<1x9x256xbf16> to vector<9x256xbf16>
    %8 = arith.extf %7 : vector<9x256xbf16> to vector<9x256xf32>
    %c2 = arith.constant 2 : index
    %c0_5 = arith.constant 0 : index
    %c0_6 = arith.constant 0 : index
    %9 = vector.load %arg3[%c2, %c0_5, %c0_6] : memref<3x9x256xbf16, #tpu.memory_space<vmem>>, vector<1x9x256xbf16>
    %10 = vector.shape_cast %9 : vector<1x9x256xbf16> to vector<9x256xbf16>
    %11 = arith.extf %10 : vector<9x256xbf16> to vector<9x256xf32>
    %12 = arith.negf %11 : vector<9x256xf32>
    %13 = math.exp %12 : vector<9x256xf32>
    %cst = arith.constant 1.000000e+00 : f32
    %14 = vector.broadcast %cst : f32 to vector<9x256xf32>
    %15 = arith.addf %14, %13 : vector<9x256xf32>
    %16 = arith.divf %14, %15 : vector<9x256xf32>
    %cst_7 = arith.constant 1.000000e+00 : f32
    %17 = vector.broadcast %cst_7 : f32 to vector<9x256xf32>
    %18 = arith.subf %17, %5 : vector<9x256xf32>
    %cst_8 = arith.constant 1.000000e+00 : f32
    %19 = vector.broadcast %cst_8 : f32 to vector<9x256xf32>
    %20 = arith.subf %19, %8 : vector<9x256xf32>
    %21 = arith.mulf %18, %20 : vector<9x256xf32>
    %22 = arith.mulf %21, %16 : vector<9x256xf32>
    %23 = tpu.concatenate %22, %22, %22, %22 in 0 : vector<9x256xf32>, vector<9x256xf32>, vector<9x256xf32>, vector<9x256xf32> -> vector<36x256xf32>
    %c0_9 = arith.constant 0 : index
    %c0_10 = arith.constant 0 : index
    %c0_11 = arith.constant 0 : index
    %24 = vector.load %arg2[%c0_9, %c0_10, %c0_11] : memref<4x36x256xbf16, #tpu.memory_space<vmem>>, vector<1x36x256xbf16>
    %25 = vector.shape_cast %24 : vector<1x36x256xbf16> to vector<36x256xbf16>
    %26 = arith.extf %25 : vector<36x256xbf16> to vector<36x256xf32>
    %27 = arith.mulf %23, %26 : vector<36x256xf32>
    %28 = arith.mulf %18, %8 : vector<9x256xf32>
    %29 = arith.mulf %28, %16 : vector<9x256xf32>
    %30 = tpu.concatenate %29, %29, %29, %29 in 0 : vector<9x256xf32>, vector<9x256xf32>, vector<9x256xf32>, vector<9x256xf32> -> vector<36x256xf32>
    %c1_12 = arith.constant 1 : index
    %c0_13 = arith.constant 0 : index
    %c0_14 = arith.constant 0 : index
    %31 = vector.load %arg2[%c1_12, %c0_13, %c0_14] : memref<4x36x256xbf16, #tpu.memory_space<vmem>>, vector<1x36x256xbf16>
    %32 = vector.shape_cast %31 : vector<1x36x256xbf16> to vector<36x256xbf16>
    %33 = arith.extf %32 : vector<36x256xbf16> to vector<36x256xf32>
    %34 = arith.mulf %30, %33 : vector<36x256xf32>
    %35 = arith.addf %27, %34 : vector<36x256xf32>
    %36 = arith.mulf %5, %20 : vector<9x256xf32>
    %37 = arith.mulf %36, %16 : vector<9x256xf32>
    %38 = tpu.concatenate %37, %37, %37, %37 in 0 : vector<9x256xf32>, vector<9x256xf32>, vector<9x256xf32>, vector<9x256xf32> -> vector<36x256xf32>
    %c2_15 = arith.constant 2 : index
    %c0_16 = arith.constant 0 : index
    %c0_17 = arith.constant 0 : index
    %39 = vector.load %arg2[%c2_15, %c0_16, %c0_17] : memref<4x36x256xbf16, #tpu.memory_space<vmem>>, vector<1x36x256xbf16>
    %40 = vector.shape_cast %39 : vector<1x36x256xbf16> to vector<36x256xbf16>
    %41 = arith.extf %40 : vector<36x256xbf16> to vector<36x256xf32>
    %42 = arith.mulf %38, %41 : vector<36x256xf32>
    %43 = arith.addf %35, %42 : vector<36x256xf32>
    %44 = arith.mulf %5, %8 : vector<9x256xf32>
    %45 = arith.mulf %44, %16 : vector<9x256xf32>
    %46 = tpu.concatenate %45, %45, %45, %45 in 0 : vector<9x256xf32>, vector<9x256xf32>, vector<9x256xf32>, vector<9x256xf32> -> vector<36x256xf32>
    %c3 = arith.constant 3 : index
    %c0_18 = arith.constant 0 : index
    %c0_19 = arith.constant 0 : index
    %47 = vector.load %arg2[%c3, %c0_18, %c0_19] : memref<4x36x256xbf16, #tpu.memory_space<vmem>>, vector<1x36x256xbf16>
    %48 = vector.shape_cast %47 : vector<1x36x256xbf16> to vector<36x256xbf16>
    %49 = arith.extf %48 : vector<36x256xbf16> to vector<36x256xf32>
    %50 = arith.mulf %46, %49 : vector<36x256xf32>
    %51 = arith.addf %43, %50 : vector<36x256xf32>
    %c0_20 = arith.constant 0 : index
    %c0_21 = arith.constant 0 : index
    %52 = vector.load %arg6[%c0_20, %c0_21] : memref<8x256xf32, #tpu.memory_space<vmem>>, vector<8x256xf32>
    %c0_22 = arith.constant 0 : index
    %c0_23 = arith.constant 0 : index
    %53 = vector.load %arg4[%c0_22, %c0_23] : memref<8x36xbf16, #tpu.memory_space<vmem>>, vector<8x36xbf16>
    %54 = arith.truncf %51 : vector<36x256xf32> to vector<36x256xbf16>
    %cst_24 = arith.constant dense<0.000000e+00> : vector<8x256xf32>
    %55 = tpu.matmul %53, %54, %cst_24 {dimension_numbers = #tpu.dot_dimension_numbers<[1], [0], [0], [1], [0, 0, 1, 1], [], []>} : vector<8x36xbf16>, vector<36x256xbf16>, vector<8x256xf32> -> vector<8x256xf32>
    %56 = arith.addf %52, %55 : vector<8x256xf32>
    %c0_25 = arith.constant 0 : index
    %c0_26 = arith.constant 0 : index
    %57 = vector.load %arg6[%c0_25, %c0_26] : memref<8x256xf32, #tpu.memory_space<vmem>>, vector<8x256xf32>
    tpu.vector_store %arg6[%c0_25, %c0_26], %56 {strides = array<i32>} : memref<8x256xf32, #tpu.memory_space<vmem>>, vector<8x256xf32>,
    %c0_i32_27 = arith.constant 0 : i32
    %58 = arith.cmpi eq, %arg1, %c0_i32_27 : i32
    %59 = arith.extui %58 : i1 to i32
    %c0_i32_28 = arith.constant 0 : i32
    %60 = arith.cmpi ne, %59, %c0_i32_28 : i32
    scf.if %60 {
      %c0_29 = arith.constant 0 : index
      %c0_30 = arith.constant 0 : index
      %61 = vector.load %arg6[%c0_29, %c0_30] : memref<8x256xf32, #tpu.memory_space<vmem>>, vector<8x256xf32>
      %c0_31 = arith.constant 0 : index
      %c0_32 = arith.constant 0 : index
      %62 = vector.load %arg5[%c0_31, %c0_32] : memref<8x256xf32, #tpu.memory_space<vmem>>, vector<8x256xf32>
      tpu.vector_store %arg5[%c0_31, %c0_32], %61 {strides = array<i32>} : memref<8x256xf32, #tpu.memory_space<vmem>>, vector<8x256xf32>,
    } else {
    }
    return
  }
  func.func @transform_0(%arg0: i32, %arg1: i32) -> (i32, i32, i32) {
    %c0_i32 = arith.constant 0 : i32
    %c0_i32_0 = arith.constant 0 : i32
    return %c0_i32, %arg1, %arg0 : i32, i32, i32
  }
  func.func @transform_1(%arg0: i32, %arg1: i32) -> (i32, i32, i32) {
    %c0_i32 = arith.constant 0 : i32
    %c0_i32_0 = arith.constant 0 : i32
    %c0_i32_1 = arith.constant 0 : i32
    return %c0_i32, %c0_i32_0, %arg0 : i32, i32, i32
  }
  func.func @transform_2(%arg0: i32, %arg1: i32) -> (i32, i32) {
    %c0_i32 = arith.constant 0 : i32
    %c0_i32_0 = arith.constant 0 : i32
    return %c0_i32, %arg1 : i32, i32
  }
  func.func @transform_3(%arg0: i32, %arg1: i32) -> (i32, i32) {
    %c0_i32 = arith.constant 0 : i32
    %c0_i32_0 = arith.constant 0 : i32
    return %c0_i32, %arg0 : i32, i32
  }
}

</mosaic_0001>

<bundles_post_ra>
// kernel: deformable_conv_v2_forward.1
= control target key start
LH: loop header
LB: loop body
LE: loop exit
PB: predicated region body
PF: predicated region fallthrough
CT: control target
= control target key end

     0   :  { %s1125_s12 = smov 0   ;;  %s1127_s13 = smov 0   ;;  %s1656_s0 = inlined_call_operand.vmem [shape: bf16[4,36,512], index: 0, kind: input, shape index: {}]   ;;  %s1657_s1 = inlined_call_operand.vmem [shape: bf16[3,9,512], index: 1, kind: input, shape index: {}]   ;;  %s1658_s2 = inlined_call_operand.vmem [shape: bf16[8,36], index: 2, kind: input, shape index: {}]   ;;  %s1659_s3 = inlined_call_operand.vmem [shape: f32[8,512], index: 3, kind: output, shape index: {}]  }
   0x1   :  { %s1129_s14 = smov 0   ;;  %s1131_s15 = smov 0  }
   0x2   :  { %s1133_s16 = smov 0  }
   0x3 LB: > { %s25_s17 = sadd.s32 1, %s1098_s15  ;;  %p41_p1 = scmp.ne.s32.totalorder %s1090_s13, %s1086_s12  ;;  %s1102_s16 = sphi %s1133_s16, %s13_s16   ;;  %s1098_s15 = sphi %s1131_s15, %s1698_s15   ;;  %s1094_s14 = sphi %s1129_s14, %s1697_s14   ;;  %s1090_s13 = sphi %s1127_s13, %s1696_s13   ;;  %s1086_s12 = sphi %s1125_s12, %s1695_s12  }
   0x4   : > { %p27_p0 = scmp.ge.s32.totalorder %s25_s17, 2  ;;  %p42_p2 = scmp.eq.s32.totalorder %s1102_s16, 0 }
   0x5   : > { %s34_s20 = sadd.s32 1, %s1090_s13  ;;  %p966_p5 = scmp.ge.s32.totalorder %s1102_s16, 2 }
   0x6   : > { %s1700_s17 = smov (%p27_p0, %s25_s17), 0  ;;  %p1156_p3 = por %p42_p2, %p41_p1 }
   0x7   : > { %s30_s19 = ssub.s32 %s1098_s15, %s1700_s17  ;;  %152 = sbr.rel (%p966_p5) target bundleno = 33 (0x21), region = 20 }
   0x8   : > { %p32_p4 = scmp.eq.s32.totalorder %s30_s19, 0 }
   0xa   : > { %s1164_s21 = scalar_select %p32_p4, %s1090_s13, %s34_s20  }
   0xc   : > { %155 = sbr.rel (!%p1156_p3) target bundleno = 26 (0x1a), region = 24  ;;  %s157_s22 = sand.u32 (%p1156_p3), 1, %s1090_s13  }
   0xd   : > { %s1001_s23 = sshll.u32 (%p1156_p3), %s1098_s15, 3  ;;  %s1003_s24 = smul.u32 (%p1156_p3), 160, %s157_s22 }
   0xe   : > { %s1174_s27 = scalar_lea.vmem (%p1156_p3), %s1656_s0, %s1001_s23 }
   0xf   : > { %v232_v0 = vld [vmem:[%s1174_s27] sm:$0xff] (%p1156_p3)  ;;  %v234_v1 = vld [vmem:[%s1174_s27 + $0x10] sm:$0xff] (%p1156_p3)  ;;  %s1182_s28 = scalar_lea.vmem (%p1156_p3), [#allocation3], %s1003_s24 }
  0x10   : > { %v236_v2 = vld [vmem:[%s1174_s27 + $0x20] sm:$0xff] (%p1156_p3)  ;;  %v238_v3 = vld [vmem:[%s1174_s27 + $0x30] sm:$0xff] (%p1156_p3)  ;;  %233 = vst [vmem:[%s1182_s28] sm:$0xff] (%p1156_p3), %v232_v0  ;;  %235 = vst [vmem:[%s1182_s28 + $0x8] sm:$0xff] (%p1156_p3), %v234_v1 }
  0x11   : > { %v240_v4 = vld [vmem:[%s1174_s27 + $0x40] sm:$0xff]  ;;  %v242_v5 = vld [vmem:[%s1174_s27 + $0x50] sm:$0xff]  ;;  %237 = vst [vmem:[%s1182_s28 + $0x10] sm:$0xff] %v236_v2  ;;  %239 = vst [vmem:[%s1182_s28 + $0x18] sm:$0xff] %v238_v3 }
  0x12   : > { %241 = vst [vmem:[%s1182_s28 + $0x20] sm:$0xff] %v240_v4  ;;  %243 = vst [vmem:[%s1182_s28 + $0x28] sm:$0xff] %v242_v5  ;;  %v244_v6 = vld [vmem:[%s1174_s27 + $0x60] sm:$0xff]  ;;  %v246_v7 = vld [vmem:[%s1174_s27 + $0x70] sm:$0xff] }
  0x13   : > { %v248_v8 = vld [vmem:[%s1174_s27 + $0x80] sm:$0xff]  ;;  %245 = vst [vmem:[%s1182_s28 + $0x30] sm:$0xff] %v244_v6  ;;  %247 = vst [vmem:[%s1182_s28 + $0x38] sm:$0xff] %v246_v7  ;;  %v250_v9 = vld [vmem:[%s1174_s27 + $0x90] sm:$0xff] }
  0x14   : > { %249 = vst [vmem:[%s1182_s28 + $0x40] sm:$0xff] %v248_v8  ;;  %v252_v10 = vld [vmem:[%s1174_s27 + $0xa0] sm:$0xff]  ;;  %v254_v11 = vld [vmem:[%s1174_s27 + $0xb0] sm:$0xff]  ;;  %251 = vst [vmem:[%s1182_s28 + $0x48] sm:$0xff] %v250_v9 }
  0x15   : > { %253 = vst [vmem:[%s1182_s28 + $0x50] sm:$0xff] %v252_v10  ;;  %255 = vst [vmem:[%s1182_s28 + $0x58] sm:$0xff] %v254_v11  ;;  %v256_v12 = vld [vmem:[%s1174_s27 + $0xc0] sm:$0xff]  ;;  %v258_v13 = vld [vmem:[%s1174_s27 + $0xd0] sm:$0xff] }
  0x16   : > { %v260_v14 = vld [vmem:[%s1174_s27 + $0xe0] sm:$0xff]  ;;  %257 = vst [vmem:[%s1182_s28 + $0x60] sm:$0xff] %v256_v12  ;;  %259 = vst [vmem:[%s1182_s28 + $0x68] sm:$0xff] %v258_v13  ;;  %v262_v15 = vld [vmem:[%s1174_s27 + $0xf0] sm:$0xff] }
  0x17   : > { %261 = vst [vmem:[%s1182_s28 + $0x70] sm:$0xff] %v260_v14  ;;  %v264_v16 = vld [vmem:[%s1174_s27 + $0x100] sm:$0xff]  ;;  %v266_v17 = vld [vmem:[%s1174_s27 + $0x110] sm:$0xff]  ;;  %263 = vst [vmem:[%s1182_s28 + $0x78] sm:$0xff] %v262_v15 }
  0x18   : > { %265 = vst [vmem:[%s1182_s28 + $0x80] sm:$0xff] %v264_v16  ;;  %267 = vst [vmem:[%s1182_s28 + $0x88] sm:$0xff] %v266_v17  ;;  %v268_v18 = vld [vmem:[%s1174_s27 + $0x120] sm:$0xff]  ;;  %v270_v19 = vld [vmem:[%s1174_s27 + $0x130] sm:$0xff] }
  0x19   : > { %269 = vst [vmem:[%s1182_s28 + $0x90] sm:$0xff] %v268_v18  ;;  %271 = vst [vmem:[%s1182_s28 + $0x98] sm:$0xff] %v270_v19 }
  0x1a PF: > { %277 = sbr.rel (!%p1156_p3) target bundleno = 33 (0x21), region = 62  ;;  %s279_s29 = sand.u32 (%p1156_p3), 1, %s1090_s13  }
  0x1b   : > { %s1002_s30 = sshll.u32 (%p1156_p3), %s1098_s15, 3  ;;  %s1004_s4 = smul.u32 (%p1156_p3), 48, %s279_s29 }
  0x1c   : > { %s284_s7 = scalar_lea.vmem (%p1156_p3), %s1657_s1, %s1002_s30 }
  0x1d   : > { %v323_v20 = vld [vmem:[%s284_s7] sm:$0xff] (%p1156_p3)  ;;  %v325_v21 = vld [vmem:[%s284_s7 + $0x10] sm:$0xff] (%p1156_p3)  ;;  %s281_s8 = scalar_lea.vmem (%p1156_p3), [#allocation4], %s1004_s4 }
  0x1e   : > { %v327_v22 = vld [vmem:[%s284_s7 + $0x20] sm:$0xff] (%p1156_p3)  ;;  %v329_v23 = vld [vmem:[%s284_s7 + $0x30] sm:$0xff] (%p1156_p3)  ;;  %324 = vst [vmem:[%s281_s8] sm:$0xff] (%p1156_p3), %v323_v20  ;;  %326 = vst [vmem:[%s281_s8 + $0x8] sm:$0xff] (%p1156_p3), %v325_v21 }
  0x1f   : > { %v331_v24 = vld [vmem:[%s284_s7 + $0x40] sm:$0xff]  ;;  %v333_v25 = vld [vmem:[%s284_s7 + $0x50] sm:$0xff]  ;;  %328 = vst [vmem:[%s281_s8 + $0x10] sm:$0xff] %v327_v22  ;;  %330 = vst [vmem:[%s281_s8 + $0x18] sm:$0xff] %v329_v23 }
  0x20   : > { %332 = vst [vmem:[%s281_s8 + $0x20] sm:$0xff] %v331_v24  ;;  %334 = vst [vmem:[%s281_s8 + $0x28] sm:$0xff] %v333_v25 }
  0x21 PF: > { %p971_p6 = scmp.ge.s32.totalorder %s1102_s16, 1  ;;  %p339_p7 = scmp.lt.s32.totalorder %s1102_s16, 3 }
  0x23   : > { %p340_p8 = pnand %p971_p6, %p339_p7 }
  0x24   : > { %s346_s9 = sand.u32 (!%p340_p8), 1, %s1086_s12   ;;  %s972_s22 = sshll.u32 (!%p340_p8), %s1094_s14, 1 }
  0x25   : > { %343 = sbr.rel (%p340_p8) target bundleno = 340 (0x154), region = 100  ;;  %p392_p9 = scmp.lt.s32.totalorder (!%p340_p8), %s972_s22, 3 }
  0x26   : > { %s1006_s10 = smul.u32 (!%p340_p8), 48, %s346_s9 }
  0x27   : > { %s1005_s18 = smul.u32 (!%p340_p8), 160, %s346_s9 }
  0x28   : > { %s355_s11 = scalar_lea.vmem (!%p340_p8), [#allocation4], %s1006_s10 }
  0x29   : > { %s1228_s12 = scalar_lea.vmem (!%p340_p8), [#allocation3], %s1005_s18 }
  0x2a   : > { %v1104_v26 = vmov 0   ;;  %v976_v27 = vld [vmem:[%s355_s11 + $0x20] sm:$0xff]  ;;  %v977_v28 = vld [vmem:[%s355_s11 + $0x28] sm:$0x11]  ;;  %v974_v38 = vld [vmem:[%s355_s11 + $0x10] sm:$0xff]  ;;  %vm490_vm0 = vcmask 1042432  }
  0x2b   : > { %835 = vmatprep.mubr.bf16.mxu0 %v1104_v26  ;;  %v420_v29 = vunpack.c.l.bf16 %v976_v27  ;;  %v421_v30 = vunpack.c.h.bf16 %v976_v27  ;;  %v422_v31 = vunpack.c.l.bf16 %v977_v28  ;;  %v423_v32 = vunpack.c.h.bf16 %v977_v28  ;;  %v404_v37 = vld [vmem:[%s355_s11] sm:$0xff]  ;;  %v405_v39 = vld [vmem:[%s355_s11 + $0x8] sm:$0x11]  ;;  %v975_v40 = vld [vmem:[%s355_s11 + $0x18] sm:$0x11]  ;;  %s1702_s22 = smov (!%p392_p9, %s972_s22), 3 }
  0x2c   : > { %v407_v41 = vunpack.c.h.bf16 %v404_v37  ;;  %v414_v42 = vunpack.c.h.bf16 %v974_v38  ;;  %v409_v43 = vunpack.c.h.bf16 %v405_v39  ;;  %v416_v44 = vunpack.c.h.bf16 %v975_v40  ;;  %v1231_v45 = vld [vmem:[%s1228_s12 + $0x20] sm:$0x33]  ;;  %v1234_v46 = vld [vmem:[%s1228_s12 + $0x48] sm:$0x33]  ;;  %v1237_v49 = vld [vmem:[%s1228_s12 + $0x70] sm:$0x33] }
  0x2d   : > { %v978_v33 = vmul.f32 -1.442695, %v420_v29  ;;  %v979_v34 = vmul.f32 -1.442695, %v421_v30  ;;  %v980_v35 = vmul.f32 -1.442695, %v422_v31  ;;  %v521_v51 = vunpack.c.h.bf16 %v1231_v45 }
  0x2e   : > { %v981_v36 = vmul.f32 -1.442695, %v423_v32  ;;  %v449_v47 = vsub.f32 1.0, %v407_v41  ;;  %v453_v48 = vsub.f32 1.0, %v414_v42  ;;  %v451_v50 = vsub.f32 1.0, %v409_v43  ;;  %v1260_v15 = vld [vmem:[%s1228_s12 + $0x10] sm:$0xff] }
  0x2f   : > { %1048 = vpow2.f32 %v978_v33  ;;  %v455_v52 = vsub.f32 1.0, %v416_v44  ;;  %v595_v53 = vunpack.c.h.bf16 %v1234_v46  ;;  %v406_v54 = vunpack.c.l.bf16 %v404_v37  ;;  %v1257_v10 = vld [vmem:[%s1228_s12 + $0x98] sm:$0x33]  ;;  %v1275_v24 = vld [vmem:[%s1228_s12 + $0x40] sm:$0xff]  ;;  %v1285_v30 = vld [vmem:[%s1228_s12 + $0x68] sm:$0xff]  ;;  %s973_s23 = sshll.u32 %s1702_s22, 3 }
  0x30   : > { %1050 = vpow2.f32 %v979_v34  ;;  %v520_v55 = vunpack.c.l.bf16 %v1231_v45  ;;  %v679_v57 = vunpack.c.h.bf16 %v1237_v49  ;;  %v408_v58 = vunpack.c.l.bf16 %v405_v39  ;;  %v1267_v19 = vld [vmem:[%s1228_s12 + $0x18] sm:$0xff]  ;;  %v1278_v25 = vld [vmem:[%s1228_s12 + $0x60] sm:$0xff]  ;;  %v1288_v31 = vld [vmem:[%s1228_s12 + $0x88] sm:$0xff]  ;;  %s395_s26 = scalar_lea.vmem %s1659_s3, %s973_s23 }
  0x31   : > { %1052 = vpow2.f32 %v980_v35  ;;  %v413_v59 = vunpack.c.l.bf16 %v974_v38  ;;  %v594_v60 = vunpack.c.l.bf16 %v1234_v46  ;;  %v1244_v63 = vmul.f32 %v453_v48, %v449_v47  ;;  %v1272_v23 = vld [vmem:[%s1228_s12 + $0x38] sm:$0xff]  ;;  %v1291_v32 = vld [vmem:[%s1228_s12 + $0x90] sm:$0xff] }
  0x32   : > { %1054 = vpow2.f32 %v981_v36  ;;  %v1246_v0 = vmul.f32 %v449_v47, %v414_v42  ;;  %v415_v1 = vunpack.c.l.bf16 %v975_v40  ;;  %v1248_v4 = vmul.f32 %v451_v50, %v416_v44 }
  0x33   : > { %v1250_v5 = vmul.f32 %v453_v48, %v407_v41  ;;  %v1252_v6 = vmul.f32 %v414_v42, %v407_v41  ;;  %v1254_v9 = vmul.f32 %v455_v52, %v451_v50  ;;  %v448_v11 = vsub.f32 1.0, %v406_v54  ;;  %v1299_v41 = vld [vmem:[%s1228_s12] sm:$0xff]  ;;  %v1302_v42 = vld [vmem:[%s1228_s12 + $0x8] sm:$0xff] }
  0x34   : > { %v450_v13 = vsub.f32 1.0, %v408_v58  ;;  %v452_v14 = vsub.f32 1.0, %v413_v59  ;;  %v1262_v16 = vmul.f32 %v455_v52, %v409_v43  ;;  %v1264_v17 = vmul.f32 %v416_v44, %v409_v43  ;;  %v1309_v50 = vld [vmem:[%s1228_s12 + $0x28] sm:$0xff]  ;;  %v1312_v52 = vld [vmem:[%s1228_s12 + $0x30] sm:$0xff] }
  0x35   : > { %v454_v18 = vsub.f32 1.0, %v415_v1  ;;  %v763_v20 = vunpack.c.h.bf16 %v1257_v10  ;;  %v678_v21 = vunpack.c.l.bf16 %v1237_v49  ;;  %v700_v22 = vmul.f32 %v413_v59, %v406_v54 }
  0x36   : > { %v532_v26 = vmul.f32 %v448_v11, %v413_v59  ;;  %v1280_v27 = vmul.f32 %v415_v1, %v408_v58  ;;  %v762_v28 = vunpack.c.l.bf16 %v1257_v10  ;;  %v456_v33 = vmul.f32 %v452_v14, %v448_v11 }
  0x37   : > { %v534_v34 = vmul.f32 %v450_v13, %v415_v1  ;;  %v616_v35 = vmul.f32 %v452_v14, %v406_v54  ;;  %v458_v37 = vmul.f32 %v454_v18, %v450_v13  ;;  %v1294_v38 = vmul.f32 %v454_v18, %v408_v58  ;;  %v1315_v54 = vld [vmem:[%s1228_s12 + $0x50] sm:$0xff]  ;;  %v1325_v1 = vld [vmem:[%s1228_s12 + $0x78] sm:$0xff] }
  0x38   : > { %vm468_vm1 = vcmask 1040384   ;;  %vm479_vm2 = vcmask 1041408   ;;  %vm793_vm3 = vcmask 293888  }
  0x3c   : > { %v1049_v56 = vpop.eup %1048 }
  0x3d   : > { %v1051_v61 = vpop.eup %1050  ;;  %v436_v62 = vadd.f32 1.0, %v1049_v56 }
  0x3e   : > { %v1053_v2 = vpop.eup %1052  ;;  %v437_v3 = vadd.f32 1.0, %v1051_v61 }
  0x3f   : > { %v1055_v7 = vpop.eup %1054  ;;  %v438_v8 = vadd.f32 1.0, %v1053_v2  ;;  %1056 = vrcp.f32 %v436_v62  ;;  %v1322_v62 = vld [vmem:[%s1228_s12 + $0x58] sm:$0xff]  ;;  %v1328_v2 = vld [vmem:[%s1228_s12 + $0x80] sm:$0xff] }
  0x40   : > { %v439_v12 = vadd.f32 1.0, %v1055_v7  ;;  %1058 = vrcp.f32 %v437_v3 }
  0x41   : > { %1060 = vrcp.f32 %v438_v8 }
  0x42   : > { %1062 = vrcp.f32 %v439_v12 }
  0x4c   : > { %v1057_v58 = vpop.eup %1056 }
  0x4d   : > { %v1059_v3 = vpop.eup %1058  ;;  %v1350_v56 = vmul.f32 %v1057_v58, %v456_v33  ;;  %v1352_v7 = vmul.f32 %v1057_v58, %v532_v26  ;;  %v1354_v8 = vmul.f32 %v1057_v58, %v616_v35  ;;  %v1356_v11 = vmul.f32 %v1057_v58, %v700_v22 }
  0x4e   : > { %v1061_v12 = vpop.eup %1060  ;;  %v1359_v13 = vmul.f32 %v1059_v3, %v1244_v63  ;;  %v1362_v14 = vmul.f32 %v1059_v3, %v1246_v0  ;;  %v1365_v61 = vmul.f32 %v1059_v3, %v1250_v5  ;;  %v1368_v59 = vmul.f32 %v1059_v3, %v1252_v6 }
  0x4f   : > { %v1063_v33 = vpop.eup %1062  ;;  %v1370_v26 = vmul.f32 %v1061_v12, %v458_v37  ;;  %v491_v35 = vrot.slane %v1350_v56, 5  ;;  %v1373_v22 = vmul.f32 %v1061_v12, %v534_v34  ;;  %v1660_v58 = vrot.slane %v1352_v7, 5 }
  0x50   : > { %v1377_v63 = vmul.f32 %v1063_v33, %v1254_v9  ;;  %v492_v0 = vrot.slane %v1359_v13, 5  ;;  %v1381_v5 = vmul.f32 %v1063_v33, %v1248_v4  ;;  %v565_v6 = vrot.slane %v1362_v14, 5 }
  0x51   : > { %v1385_v37 = vmul.f32 %v1063_v33, %v1262_v16  ;;  %v649_v34 = vrot.slane %v1365_v61, 5  ;;  %v1389_v3 = vmul.f32 %v1063_v33, %v1264_v17  ;;  %v733_v18 = vrot.slane %v1368_v59, 5 }
  0x52   : > { %v495_v9 = vrot.slane %v1377_v63, 5  ;;  %v568_v48 = vrot.slane %v1381_v5, 5  ;;  %v493_v47 = vrot.slane %v1370_v26, 5  ;;  %v566_v4 = vrot.slane %v1373_v22, 5 }
  0x53   : > { %v652_v44 = vrot.slane %v1385_v37, 5  ;;  %v736_v16 = vrot.slane %v1389_v3, 5  ;;  %v1399_v43 = vmul.f32 %v1061_v12, %v1294_v38  ;;  %v648_v17 = vrot.slane %v1354_v8, 5 }
  0x54   : > { %v496_v33 = vsel %vm490_vm0, %v492_v0, %v495_v9  ;;  %v569_v40 = vsel %vm490_vm0, %v565_v6, %v568_v48  ;;  %v494_v39 = vsel %vm490_vm0, %v491_v35, %v493_v47  ;;  %v567_v36 = vsel %vm490_vm0, %v1660_v58, %v566_v4 }
  0x55   : > { %v531_v38 = vmul.f32 %v521_v51, %v496_v33  ;;  %v605_v29 = vmul.f32 %v595_v53, %v569_v40  ;;  %v653_v9 = vsel %vm490_vm0, %v649_v34, %v652_v44  ;;  %v737_v48 = vsel %vm490_vm0, %v733_v18, %v736_v16 }
  0x56   : > { %v689_v47 = vmul.f32 %v679_v57, %v653_v9  ;;  %v773_v4 = vmul.f32 %v763_v20, %v737_v48  ;;  %v530_v51 = vmul.f32 %v520_v55, %v494_v39  ;;  %v604_v53 = vmul.f32 %v594_v60, %v567_v36 }
  0x57   : > { %v615_v40 = vadd.f32 %v605_v29, %v531_v38  ;;  %v650_v33 = vrot.slane %v1399_v43, 5  ;;  %v1432_v44 = vmul.f32 %v1061_v12, %v1280_v27  ;;  %v732_v16 = vrot.slane %v1356_v11, 5 }
  0x58   : > { %v614_v58 = vadd.f32 %v604_v53, %v530_v51  ;;  %v470_v57 = vrot.slane %v1359_v13, 7  ;;  %v473_v9 = vrot.slane %v1377_v63, 7  ;;  %v481_v20 = vrot.slane %v1359_v13, 6 }
  0x59   : > { %v699_v45 = vadd.f32 %v689_v47, %v615_v40  ;;  %v651_v46 = vsel %vm490_vm0, %v648_v17, %v650_v33  ;;  %v734_v55 = vrot.slane %v1432_v44, 5  ;;  %v484_v60 = vrot.slane %v1377_v63, 6 }
  0x5a   : > { %v688_v27 = vmul.f32 %v678_v21, %v651_v46  ;;  %v474_v29 = vsel %vm468_vm1, %v470_v57, %v473_v9  ;;  %v545_v36 = vrot.slane %v1362_v14, 7  ;;  %v548_v39 = vrot.slane %v1381_v5, 7 }
  0x5b   : > { %v783_v12 = vadd.f32 %v773_v4, %v699_v45  ;;  %v735_v38 = vsel %vm490_vm0, %v732_v16, %v734_v55  ;;  %v485_v48 = vsel %vm479_vm2, %v481_v20, %v484_v60  ;;  %v504_v47 = vsel %vm479_vm2, %v474_v29, %v481_v20 }
  0x5c   : > { %v698_v51 = vadd.f32 %v688_v27, %v614_v58  ;;  %v772_v49 = vmul.f32 %v762_v28, %v735_v38  ;;  %v506_v21 = vsel %vm490_vm0, %v485_v48, %v492_v0  ;;  %v1662_v53 = vunpack.c.h.bf16 %v1260_v15 }
  0x5d   : > { %v792_v33 = vpack.c.bf16 %v783_v12, %v783_v12  ;;  %v1663_v4 = vunpack.c.h.bf16 %v1267_v19  ;;  %v549_v45 = vsel %vm468_vm1, %v545_v36, %v548_v39  ;;  %v555_v46 = vrot.slane %v1362_v14, 6 }
  0x5e   : > { %v527_v40 = vmul.f32 %v1662_v53, %v504_v47  ;;  %v782_v20 = vadd.f32 %v772_v49, %v698_v51  ;;  %v558_v58 = vrot.slane %v1381_v5, 6  ;;  %v629_v10 = vrot.slane %v1365_v61, 7 }
  0x5f   : > { %v529_v9 = vmul.f32 %v1663_v4, %v506_v21  ;;  %v632_v28 = vrot.slane %v1385_v37, 7  ;;  %997 = vmatprep.subr.msk.bf16.mxu0 %vm479_vm2, %v792_v33  ;;  %v577_v0 = vsel %vm479_vm2, %v549_v45, %v555_v46  ;;  %v639_v55 = vrot.slane %v1365_v61, 6 }
  0x60   : > { %v642_v60 = vrot.slane %v1385_v37, 6  ;;  %v713_v27 = vrot.slane %v1368_v59, 7  ;;  %v791_v29 = vpack.c.bf16 %v782_v20, %v782_v20  ;;  %v559_v39 = vsel %vm479_vm2, %v555_v46, %v558_v58 }
  0x61   : > { %v1664_v12 = vunpack.c.h.bf16 %v1272_v23  ;;  %v633_v48 = vsel %vm468_vm1, %v629_v10, %v632_v28  ;;  %v579_v47 = vsel %vm490_vm0, %v559_v39, %v565_v6  ;;  %v716_v21 = vrot.slane %v1389_v3, 7 }
  0x62   : > { %v643_v51 = vsel %vm479_vm2, %v639_v55, %v642_v60  ;;  %v661_v49 = vsel %vm479_vm2, %v633_v48, %v639_v55  ;;  %v798_v53 = vsel %vm479_vm2, %v791_v29, 0  ;;  %v1665_v33 = vunpack.c.h.bf16 %v1275_v24 }
  0x63   : > { %v601_v38 = vmul.f32 %v1664_v12, %v577_v0  ;;  %v663_v46 = vsel %vm490_vm0, %v643_v51, %v649_v34  ;;  %814 = vmatpush1.bf16.msra.mxu0 %v798_v53  ;;  %v1666_v20 = vunpack.c.h.bf16 %v1278_v25  ;;  %v1667_v58 = vunpack.c.h.bf16 %v1285_v30 }
  0x64   : > { %v603_v4 = vmul.f32 %v1665_v33, %v579_v47  ;;  %v717_v0 = vsel %vm468_vm1, %v713_v27, %v716_v21  ;;  %v723_v55 = vrot.slane %v1368_v59, 6  ;;  %v469_v29 = vrot.slane %v1350_v56, 7 }
  0x65   : > { %v611_v45 = vadd.f32 %v601_v38, %v527_v40  ;;  %v685_v6 = vmul.f32 %v1666_v20, %v661_v49  ;;  %v687_v28 = vmul.f32 %v1667_v58, %v663_v46  ;;  %v726_v40 = vrot.slane %v1389_v3, 6 }
  0x66   : > { %v613_v60 = vadd.f32 %v603_v4, %v529_v9  ;;  %v471_v34 = vrot.slane %v1370_v26, 7  ;;  %v745_v12 = vsel %vm479_vm2, %v717_v0, %v723_v55  ;;  %v480_v38 = vrot.slane %v1350_v56, 6 }
  0x67   : > { %v695_v39 = vadd.f32 %v685_v6, %v611_v45  ;;  %v482_v48 = vrot.slane %v1370_v26, 6  ;;  %v727_v51 = vsel %vm479_vm2, %v723_v55, %v726_v40  ;;  %v1668_v49 = vunpack.c.h.bf16 %v1288_v31 }
  0x68   : > { %v697_v47 = vadd.f32 %v687_v28, %v613_v60  ;;  %v472_v9 = vsel %vm468_vm1, %v469_v29, %v471_v34  ;;  %v747_v53 = vsel %vm490_vm0, %v727_v51, %v733_v18  ;;  %v544_v45 = vrot.slane %v1352_v7, 7 }
  0x69   : > { %v769_v21 = vmul.f32 %v1668_v49, %v745_v12  ;;  %v483_v33 = vsel %vm479_vm2, %v480_v38, %v482_v48  ;;  %v503_v4 = vsel %vm479_vm2, %v472_v9, %v480_v38  ;;  %v1669_v46 = vunpack.c.h.bf16 %v1291_v32 }
  0x6a   : > { %v505_v58 = vsel %vm490_vm0, %v483_v33, %v491_v35  ;;  %v1670_v28 = vunpack.c.l.bf16 %v1260_v15  ;;  %v1671_v55 = vunpack.c.l.bf16 %v1267_v19  ;;  %v546_v60 = vrot.slane %v1373_v22, 7 }
  0x6b   : > { %v771_v20 = vmul.f32 %v1669_v46, %v747_v53  ;;  %v779_v6 = vadd.f32 %v769_v21, %v695_v39  ;;  %v554_v40 = vrot.slane %v1352_v7, 6  ;;  %v556_v34 = vrot.slane %v1373_v22, 6 }
  0x6c   : > { %v526_v0 = vmul.f32 %v1670_v28, %v503_v4  ;;  %v528_v18 = vmul.f32 %v1671_v55, %v505_v58  ;;  %v628_v38 = vrot.slane %v1354_v8, 7  ;;  %v630_v39 = vrot.slane %v1399_v43, 7 }
  0x6d   : > { %v781_v12 = vadd.f32 %v771_v20, %v697_v47  ;;  %v638_v48 = vrot.slane %v1354_v8, 6  ;;  %v547_v35 = vsel %vm468_vm1, %v544_v45, %v546_v60  ;;  %v557_v15 = vsel %vm479_vm2, %v554_v40, %v556_v34 }
  0x6e   : > { %v640_v19 = vrot.slane %v1399_v43, 6  ;;  %v712_v51 = vrot.slane %v1356_v11, 7  ;;  %v576_v21 = vsel %vm479_vm2, %v547_v35, %v554_v40  ;;  %v1672_v9 = vrot.slane %v1352_v7, 5 }
  0x6f   : > { %v790_v49 = vpack.c.bf16 %v781_v12, %v779_v6  ;;  %v631_v53 = vsel %vm468_vm1, %v628_v38, %v630_v39  ;;  %v1673_v33 = vunpack.c.l.bf16 %v1272_v23  ;;  %v1674_v46 = vunpack.c.l.bf16 %v1275_v24 }
  0x70   : > { %v578_v47 = vsel %vm490_vm0, %v557_v15, %v1672_v9  ;;  %v641_v58 = vsel %vm479_vm2, %v638_v48, %v640_v19  ;;  %v660_v28 = vsel %vm479_vm2, %v631_v53, %v638_v48  ;;  %v1675_v55 = vunpack.c.l.bf16 %v1278_v25 }
  0x71   : > { %v600_v4 = vmul.f32 %v1673_v33, %v576_v21  ;;  %v602_v20 = vmul.f32 %v1674_v46, %v578_v47  ;;  %815 = vmatprep.subr.bf16.mxu0 %v790_v49  ;;  %v662_v6 = vsel %vm490_vm0, %v641_v58, %v648_v17  ;;  %v714_v40 = vrot.slane %v1432_v44, 7 }
  0x72   : > { %v684_v60 = vmul.f32 %v1675_v55, %v660_v28  ;;  %v722_v23 = vrot.slane %v1356_v11, 6  ;;  %v1676_v24 = vunpack.c.l.bf16 %v1285_v30  ;;  %v724_v35 = vrot.slane %v1432_v44, 6 }
  0x73   : > { %v610_v34 = vadd.f32 %v600_v4, %v526_v0  ;;  %v612_v12 = vadd.f32 %v602_v20, %v528_v18  ;;  %v715_v48 = vsel %vm468_vm1, %v712_v51, %v714_v40  ;;  %v502_v17 = vsel %vm468_vm1, %v1377_v63, %v470_v57 }
  0x74   : > { %v686_v39 = vmul.f32 %v1676_v24, %v662_v6  ;;  %v1677_v25 = vunpack.c.h.bf16 %v1299_v41  ;;  %v575_v0 = vsel %vm468_vm1, %v1381_v5, %v545_v36  ;;  %v725_v19 = vsel %vm479_vm2, %v722_v23, %v724_v35 }
  0x75   : > { %v694_v30 = vadd.f32 %v684_v60, %v610_v34  ;;  %v744_v49 = vsel %vm479_vm2, %v715_v48, %v722_v23  ;;  %v746_v21 = vsel %vm490_vm0, %v725_v19, %v732_v16  ;;  %v1678_v63 = vunpack.c.l.bf16 %v1288_v31 }
  0x76   : > { %v523_v15 = vmul.f32 %v1677_v25, %v1359_v13  ;;  %v696_v18 = vadd.f32 %v686_v39, %v612_v12  ;;  %v1679_v13 = vunpack.c.h.bf16 %v1302_v42  ;;  %v1680_v47 = vunpack.c.h.bf16 %v1309_v50 }
  0x77   : > { %v768_v57 = vmul.f32 %v1678_v63, %v744_v49  ;;  %v1681_v36 = vunpack.c.l.bf16 %v1291_v32  ;;  %v1682_v33 = vunpack.c.h.bf16 %v1312_v52  ;;  %v659_v16 = vsel %vm468_vm1, %v1385_v37, %v629_v10 }
  0x78   : > { %v525_v9 = vmul.f32 %v1679_v13, %v502_v17  ;;  %v597_v5 = vmul.f32 %v1680_v47, %v1362_v14  ;;  %v1683_v31 = vunpack.c.h.bf16 %v1315_v54  ;;  %v1684_v28 = vunpack.c.h.bf16 %v1322_v62 }
  0x79   : > { %v770_v53 = vmul.f32 %v1681_v36, %v746_v21  ;;  %v599_v4 = vmul.f32 %v1682_v33, %v575_v0  ;;  %v778_v20 = vadd.f32 %v768_v57, %v694_v30  ;;  %v743_v32 = vsel %vm468_vm1, %v1389_v3, %v713_v27 }
  0x7a   : > { %v681_v46 = vmul.f32 %v1683_v31, %v1365_v61  ;;  %v607_v58 = vadd.f32 %v597_v5, %v523_v15  ;;  %v683_v14 = vmul.f32 %v1684_v28, %v659_v16  ;;  %v1685_v60 = vunpack.c.h.bf16 %v1325_v1 }
  0x7b   : > { %v780_v6 = vadd.f32 %v770_v53, %v696_v18  ;;  %v609_v55 = vadd.f32 %v599_v4, %v525_v9  ;;  %v1686_v10 = vunpack.c.h.bf16 %v1328_v2  ;;  %v501_v23 = vsel %vm468_vm1, %v1370_v26, %v469_v29 }
  0x7c   : > { %v765_v37 = vmul.f32 %v1685_v60, %v1368_v59  ;;  %v691_v61 = vadd.f32 %v681_v46, %v607_v58  ;;  %v1687_v34 = vunpack.c.l.bf16 %v1299_v41  ;;  %v574_v3 = vsel %vm468_vm1, %v1373_v22, %v544_v45 }
  0x7d   : > { %v767_v40 = vmul.f32 %v1686_v10, %v743_v32  ;;  %v789_v27 = vpack.c.bf16 %v780_v6, %v778_v20  ;;  %v693_v24 = vadd.f32 %v683_v14, %v609_v55  ;;  %v1688_v59 = vunpack.c.l.bf16 %v1302_v42 }
  0x7e   : > { %v522_v12 = vmul.f32 %v1687_v34, %v1350_v56  ;;  %v1689_v35 = vunpack.c.l.bf16 %v1309_v50  ;;  %v775_v17 = vadd.f32 %v765_v37, %v691_v61  ;;  %v1690_v25 = vunpack.c.l.bf16 %v1312_v52 }
  0x7f   : > { %v524_v39 = vmul.f32 %v1688_v59, %v501_v23  ;;  %v658_v41 = vsel %vm468_vm1, %v1399_v43, %v628_v38  ;;  %v1691_v56 = vunpack.c.l.bf16 %v1315_v54  ;;  %816 = vmatpush1.bf16.msra.mxu0 %v789_v27  ;;  %v777_v29 = vadd.f32 %v767_v40, %v693_v24 }
  0x80   : > { %v596_v48 = vmul.f32 %v1689_v35, %v1352_v7  ;;  %v598_v26 = vmul.f32 %v1690_v25, %v574_v3  ;;  %v1692_v42 = vunpack.c.l.bf16 %v1322_v62  ;;  %v742_v50 = vsel %vm468_vm1, %v1432_v44, %v712_v51  ;;  %v786_v44 = vld [vmem:[%s1658_s2] sm:$0xf] }
  0x81   : > { %v680_v22 = vmul.f32 %v1691_v56, %v1354_v8  ;;  %v1693_v52 = vunpack.c.l.bf16 %v1325_v1  ;;  %v1694_v43 = vunpack.c.l.bf16 %v1328_v2  ;;  %v788_v54 = vpack.c.bf16 %v777_v29, %v775_v17 }
  0x82   : > { %v606_v45 = vadd.f32 %v596_v48, %v522_v12  ;;  %v682_v15 = vmul.f32 %v1692_v42, %v658_v41  ;;  %v608_v7 = vadd.f32 %v598_v26, %v524_v39 }
  0x83   : > { %v764_v0 = vmul.f32 %v1693_v52, %v1356_v11  ;;  %v766_v38 = vmul.f32 %v1694_v43, %v742_v50  ;;  %817 = vmatprep.subr.bf16.mxu0 %v788_v54 }
  0x84   : > { %v690_v8 = vadd.f32 %v680_v22, %v606_v45  ;;  %v692_v30 = vadd.f32 %v682_v15, %v608_v7 }
  0x86   : > { %v774_v18 = vadd.f32 %v764_v0, %v690_v8  ;;  %v776_v19 = vadd.f32 %v766_v38, %v692_v30 }
  0x88   : > { %v787_v62 = vpack.c.bf16 %v776_v19, %v774_v18 }
  0x8a   : > { %818 = vmatpush1.bf16.msra.mxu0 %v787_v62 }
  0x8d   : > { %998 = vmatmul.mubr.msk.bf16.vlgmr.msra.gmra.mxu0 %vm793_vm3, %v786_v44 }
 0x14d   : > { %v837_v1 = vpop.f32.mrf.mxu0 }
 0x14e   : > { %853 = vst [vmem:[%s395_s26] sm:$0xff] %v837_v1 }
 0x14f   : > { %v839_v2 = vpop.f32.mrf.mxu0 }
 0x150   : > { %854 = vst [vmem:[%s395_s26 + $0x8] sm:$0xff] %v839_v2 }
 0x151   : > { %v841_v11 = vpop.f32.mrf.mxu0 }
 0x153   : > { %v842_v51 = vpop.f32.mrf.mxu0 }
 0x154 PF: > { %s13_s16 = sadd.s32 1, %s1102_s16   ;;  %s1695_s12 = smov %s1090_s13 }
 0x155   : > { %p10_p10 = scmp.ge.s32.totalorder %s13_s16, 4   ;;  %s1696_s13 = smov %s1164_s21 }
 0x156   : > { %s1697_s14 = smov %s1098_s15  ;;  %s1698_s15 = smov %s1700_s17 }
 0x157   :  { %12 = sbr.rel (!%p10_p10) target bundleno = 3 (0x3), region = 167 }

</bundles_post_ra>
